<compile_context>
chip_gen: v7x
topology: tpu7x:2x2x1
jax: 0.10.0
libtpu: 0.0.40
codegen_flags: <defaults>
</compile_context>

<pallas_src>
import functools
from typing import Optional, Tuple

import jax
import jax.numpy as jnp
from jax.experimental import pallas as pl
from jax.experimental.pallas import tpu as pltpu


def _round_up(x: int, m: int) -> int:
    return ((x + m - 1) // m) * m


def _round_down(x: int, m: int) -> int:
    return (x // m) * m


def _cdiv(a: int, b: int) -> int:
    return (a + b - 1) // b


def _vmem_capacity_bytes() -> int:
    try:
        cap = int(pltpu.get_tpu_info().vmem_capacity_bytes)
        if cap > 0:
            return cap
    except Exception:
        pass
    return 64 << 20  # conservative (v7x-sized) fallback


def _num_tensorcores() -> int:
    """Best-effort TensorCore count per chip; defaults to 1 (v5e/v6e)."""
    try:
        info = pltpu.get_tpu_info()
        for name in ("num_cores", "core_count", "num_tensorcores", "tensorcore_count"):
            v = getattr(info, name, None)
            if isinstance(v, int) and v > 0:
                return v
    except Exception:
        pass
    try:
        v = getattr(jax.devices()[0], "num_cores", None)
        if isinstance(v, int) and v > 0:
            return v
    except Exception:
        pass
    return 1


def _crop_copy_kernel(x_hbm, o_ref, buf, sem, *,
                      p_blk: int, p_last: int, np_blocks: int,
                      th: int, th_last: int, nh_blocks: int,
                      row_base: int, r_off: int,
                      col0: int, w_read: int, left_vmem: int, w_out: int):
    """Copies one (plane-block, row-block) of the cropped image.

    x_hbm : (NC, H, W) input left in HBM (memory_space=pl.ANY).
    o_ref : (p_blk, th, w_out) pipelined output block (VMEM).
    buf   : (p_blk, r_off + th, w_read) staging scratch (VMEM).
    sem   : DMA completion semaphore.
    All DMA offsets on the last two dims are tile-aligned by construction
    (row_base, col0 multiples of the native tile; th a tile multiple whenever
    nh_blocks > 1), so the crop itself costs zero extra HBM reads beyond the
    sub-tile residual rows/cols.
    """
    i = pl.program_id(0)  # plane-block index
    j = pl.program_id(1)  # output-row-block index

    def copy_block(pp: int, hh: int):
        rows = r_off + hh  # static per branch
        src = x_hbm.at[pl.ds(i * p_blk, pp),
                       pl.ds(row_base + j * th, rows),
                       pl.ds(col0, w_read)]
        dst = buf.at[:pp, :rows, :]
        cp = pltpu.make_async_copy(src, dst, sem.at[0])
        cp.start()
        cp.wait()
        # Residual (sub-tile) crop: static slice of the staging buffer.
        o_ref[:pp, :hh, :] = buf[:pp, r_off:r_off + hh, left_vmem:left_vmem + w_out]

    # Enumerate the (at most 4) static block-size combinations; ragged last
    # blocks get their own static-size DMA so we never read out of bounds.
    p_cases = [(p_blk, None)] if (p_last == p_blk) else [(p_blk, False), (p_last, True)]
    h_cases = [(th, None)] if (th_last == th) else [(th, False), (th_last, True)]

    for pp, p_is_last in p_cases:
        for hh, h_is_last in h_cases:
            conds = []
            if p_is_last is not None:
                conds.append((i == np_blocks - 1) if p_is_last else (i < np_blocks - 1))
            if h_is_last is not None:
                conds.append((j == nh_blocks - 1) if h_is_last else (j < nh_blocks - 1))
            if not conds:
                copy_block(pp, hh)
            else:
                cond = conds[0]
                for c in conds[1:]:
                    cond = jnp.logical_and(cond, c)
                pl.when(cond)(functools.partial(copy_block, pp, hh))


def crop2d(x: jax.Array, crop: Tuple[int, int, int, int], *,
           max_block_planes: Optional[int] = None,
           max_block_rows: Optional[int] = None) -> jax.Array:
    """Pallas equivalent of Crop2d.forward.

    Args:
        x: (N, C, H, W) array.
        crop: (left, right, top, bottom) amounts to crop.
        max_block_planes / max_block_rows: optional caps on the block sizes
            (testing / tuning knobs); default sizing is VMEM-budget driven.
    Returns:
        (N, C, H - top - bottom, W - left - right) array, same dtype as x.
    """
    assert len(crop) == 4
    left, right, top, bottom = crop
    n, c, h, w = x.shape
    h_out = h - top - bottom
    w_out = w - left - right
    assert h_out > 0 and w_out > 0, "crop removes the entire spatial extent"

    nc = n * c
    dsize = jnp.dtype(x.dtype).itemsize
    pack = max(1, 4 // dsize)   # sub-32-bit sublane packing factor
    tile_h = 8 * pack           # native sublane tile (8 f32 / 16 bf16 / 32 int8)

    # ---- what the DMA reads: tile-aligned window that covers the crop -------
    r_off = top % tile_h
    row_base = top - r_off      # aligned row start for output-row block 0

    # W crop in the DMA only when rows stay burst-friendly (review item 2).
    crop_w_in_dma = (left == 0 and right == 0) or (w_out * dsize >= 512)
    if crop_w_in_dma:
        c_off = left % 128
        col0 = left - c_off     # lane-aligned DMA column start
        w_read = c_off + w_out
        left_vmem = c_off
    else:
        col0 = 0
        w_read = w
        left_vmem = left

    # ---- generation-aware block sizing (review items 4/6/7) -----------------
    vmem_cap = _vmem_capacity_bytes()
    budget = int(vmem_cap * 0.6)  # double-buffered out + staging target

    def plane_bytes(rows: int, cols: int) -> int:
        # VMEM allocations are (tile_h, 128)-tiled; account for the padding.
        return _round_up(max(rows, 1), tile_h) * _round_up(max(cols, 1), 128) * dsize

    def footprint(p: int, rows: int) -> int:
        # 2x output block (double buffered) + 1x staging buffer.
        return p * (2 * plane_bytes(rows, w_out) + plane_bytes(r_off + rows, w_read))

    max_p = nc if max_block_planes is None else max(1, min(nc, int(max_block_planes)))
    max_th = h_out if max_block_rows is None else max(1, min(h_out, int(max_block_rows)))

    p_candidates = [p for p in range(1, max_p + 1) if footprint(p, h_out) <= budget]
    if max_th >= h_out and p_candidates:
        # Full-height blocks; pick the largest fitting plane count.
        th = h_out
        p_blk = max(p_candidates)
        num_tc = _num_tensorcores()
        if num_tc > 1 and nc > 1:
            # 2-TC parts: keep both cores busy (~2 steps/core); 1-TC parts keep
            # the single largest block (review item 5).
            target_steps = min(nc, 2 * num_tc)
            p_blk = min(p_blk, _cdiv(nc, target_steps))
    else:
        # Tiled fallback: one plane at a time, row blocks a multiple of tile_h
        # so DMA row starts stay tile-aligned (review item 7 / VMEM-overflow fix).
        p_blk = 1
        limit = max(tile_h, _round_down(min(max_th, h_out), tile_h) or tile_h)
        th = tile_h
        while th + tile_h <= limit and footprint(1, th + tile_h) <= budget:
            th += tile_h
        th = min(th, h_out)

    np_blocks = _cdiv(nc, p_blk)
    nh_blocks = _cdiv(h_out, th)
    p_last = nc - (np_blocks - 1) * p_blk
    th_last = h_out - (nh_blocks - 1) * th

    required = footprint(p_blk, th)
    vmem_limit = min(max(int(required * 1.25) + (2 << 20), 32 << 20), vmem_cap)
    vmem_limit = max(vmem_limit, min(required + (1 << 20), vmem_cap))

    # Actual (cropped, tile-aligned) HBM traffic for the scheduler hint.
    read_bytes = nc * (h_out + nh_blocks * r_off) * w_read * dsize
    write_bytes = nc * h_out * w_out * dsize

    kernel = functools.partial(
        _crop_copy_kernel,
        p_blk=p_blk, p_last=p_last, np_blocks=np_blocks,
        th=th, th_last=th_last, nh_blocks=nh_blocks,
        row_base=row_base, r_off=r_off,
        col0=col0, w_read=w_read, left_vmem=left_vmem, w_out=w_out)

    x_flat = x.reshape(nc, h, w)  # free leading-dim merge of N*C

    out_flat = pl.pallas_call(
        kernel,
        out_shape=jax.ShapeDtypeStruct((nc, h_out, w_out), x.dtype),
        grid_spec=pltpu.PrefetchScalarGridSpec(
            num_scalar_prefetch=0,
            grid=(np_blocks, nh_blocks),
            in_specs=[pl.BlockSpec(memory_space=pl.ANY)],  # stays in HBM; cropped DMA
            out_specs=pl.BlockSpec((p_blk, th, w_out), lambda i, j: (i, j, 0)),
            scratch_shapes=[
                pltpu.VMEM((p_blk, r_off + th, w_read), x.dtype),
                pltpu.SemaphoreType.DMA((1,)),
            ],
        ),
        compiler_params=pltpu.CompilerParams(
            dimension_semantics=("parallel", "arbitrary"),
            vmem_limit_bytes=int(vmem_limit),
        ),
        cost_estimate=pl.CostEstimate(
            flops=0, transcendentals=0,
            bytes_accessed=int(read_bytes + write_bytes)),
    )(x_flat)

    return out_flat.reshape(n, c, h_out, w_out)


if __name__ == "__main__":
    key = jax.random.PRNGKey(0)
    # Small NCHW input consistent with the module: batch=2, channels=4, 16x16 spatial.
    x = jax.random.normal(key, (2, 4, 16, 16), dtype=jnp.float32)

    # crop = (left, right, top, bottom)
    crop = (2, 3, 1, 4)
    left, right, top, bottom = crop
    ref = x[:, :, top: x.shape[-2] - bottom, left: x.shape[-1] - right]

    # Default (single-block) path.
    out = jax.block_until_ready(crop2d(x, crop))
    assert out.shape == ref.shape and out.dtype == ref.dtype
    assert jnp.array_equal(out, ref)

    # Zero-crop edge case (pure copy).
    out0 = jax.block_until_ready(crop2d(x, (0, 0, 0, 0)))
    assert jnp.array_equal(out0, x)

    # Ragged plane blocks (exercises the pl.when static-remainder branches).
    out_p = jax.block_until_ready(crop2d(x, crop, max_block_planes=3))
    assert jnp.array_equal(out_p, ref)

    # Row-tiled fallback path (exercises H tiling + ragged last row block).
    out_h = jax.block_until_ready(crop2d(x, crop, max_block_rows=8))
    assert jnp.array_equal(out_h, ref)

    print("KERNEL_OK")
</pallas_src>

<mosaic_0001>
module attributes {stable_mosaic.version = 11 : i64} {
  func.func @_crop_copy_kernel(%arg0: i32, %arg1: i32, %arg2: memref<8x16x16xf32, #tpu.memory_space<any>>, %arg3: memref<8x11x11xf32, #tpu.memory_space<vmem>>, %arg4: memref<8x12x16xf32, #tpu.memory_space<vmem>>, %arg5: memref<1x!tpu.dma_semaphore, #tpu.memory_space<semaphore_mem>>) attributes {dimension_semantics = [#tpu.dimension_semantics<parallel>, #tpu.dimension_semantics<arbitrary>], iteration_bounds = array<i64: 1, 1>, scalar_prefetch = 0 : i64, scratch_operands = 2 : i64, tpu.core_type = #tpu.core_type<tc>, window_params = [{}, {transform_indices = @transform_1, window_bounds = array<i64: 8, 11, 11>}]} {
    %c8_i32 = arith.constant 8 : i32
    %0 = arith.muli %arg0, %c8_i32 : i32
    %c11_i32 = arith.constant 11 : i32
    %1 = arith.muli %arg1, %c11_i32 : i32
    %c0_i32 = arith.constant 0 : i32
    %2 = arith.addi %c0_i32, %1 : i32
    %c0_i32_0 = arith.constant 0 : i32
    %c0_i32_1 = arith.constant 0 : i32
    %3 = tpu.memref_slice %arg2[%0, %2, %c0_i32_1] : memref<8x16x16xf32, #tpu.memory_space<any>> -> memref<8x12x16xf32, #tpu.memory_space<any>>
    %c0_i32_2 = arith.constant 0 : i32
    %c0_i32_3 = arith.constant 0 : i32
    %c0_i32_4 = arith.constant 0 : i32
    %4 = tpu.memref_slice %arg4[%c0_i32_2, %c0_i32_3, %c0_i32_4] : memref<8x12x16xf32, #tpu.memory_space<vmem>> -> memref<8x12x16xf32, #tpu.memory_space<vmem>>
    %5 = tpu.memref_slice %arg5[%c0_i32_0] : memref<1x!tpu.dma_semaphore, #tpu.memory_space<semaphore_mem>> -> memref<1x!tpu.dma_semaphore, #tpu.memory_space<semaphore_mem>>
    %6 = tpu.memref_squeeze %5 : memref<1x!tpu.dma_semaphore, #tpu.memory_space<semaphore_mem>> -> memref<!tpu.dma_semaphore, #tpu.memory_space<semaphore_mem>>
    tpu.enqueue_dma source(%3 : memref<8x12x16xf32, #tpu.memory_space<any>>) target(%4 : memref<8x12x16xf32, #tpu.memory_space<vmem>>) target_semaphore(%6 : memref<!tpu.dma_semaphore, #tpu.memory_space<semaphore_mem>>)
    %c0_i32_5 = arith.constant 0 : i32
    %c0_i32_6 = arith.constant 0 : i32
    %7 = tpu.memref_slice %arg2[%0, %2, %c0_i32_6] : memref<8x16x16xf32, #tpu.memory_space<any>> -> memref<8x12x16xf32, #tpu.memory_space<any>>
    %c0_i32_7 = arith.constant 0 : i32
    %c0_i32_8 = arith.constant 0 : i32
    %c0_i32_9 = arith.constant 0 : i32
    %8 = tpu.memref_slice %arg4[%c0_i32_7, %c0_i32_8, %c0_i32_9] : memref<8x12x16xf32, #tpu.memory_space<vmem>> -> memref<8x12x16xf32, #tpu.memory_space<vmem>>
    %9 = tpu.memref_slice %arg5[%c0_i32_5] : memref<1x!tpu.dma_semaphore, #tpu.memory_space<semaphore_mem>> -> memref<1x!tpu.dma_semaphore, #tpu.memory_space<semaphore_mem>>
    %10 = tpu.memref_squeeze %9 : memref<1x!tpu.dma_semaphore, #tpu.memory_space<semaphore_mem>> -> memref<!tpu.dma_semaphore, #tpu.memory_space<semaphore_mem>>
    tpu.wait_dma2 semaphore(%10 : memref<!tpu.dma_semaphore, #tpu.memory_space<semaphore_mem>>) src(%7 : memref<8x12x16xf32, #tpu.memory_space<any>>) dst(%8 : memref<8x12x16xf32, #tpu.memory_space<vmem>>)
    %c0 = arith.constant 0 : index
    %c1 = arith.constant 1 : index
    %c2 = arith.constant 2 : index
    %11 = vector.load %arg4[%c0, %c1, %c2] : memref<8x12x16xf32, #tpu.memory_space<vmem>>, vector<8x11x11xf32>
    %c0_10 = arith.constant 0 : index
    %c0_11 = arith.constant 0 : index
    %c0_12 = arith.constant 0 : index
    %12 = vector.load %arg3[%c0_10, %c0_11, %c0_12] : memref<8x11x11xf32, #tpu.memory_space<vmem>>, vector<8x11x11xf32>
    tpu.vector_store %arg3[%c0_10, %c0_11, %c0_12], %11 {strides = array<i32>} : memref<8x11x11xf32, #tpu.memory_space<vmem>>, vector<8x11x11xf32>,
    return
  }
  func.func @transform_1(%arg0: i32, %arg1: i32) -> (i32, i32, i32) {
    %c0_i32 = arith.constant 0 : i32
    %c0_i32_0 = arith.constant 0 : i32
    return %arg0, %arg1, %c0_i32 : i32, i32, i32
  }
}

</mosaic_0001>

<bundles_post_ra>
// kernel: tpu_custom_call.1
= control target key start
LH: loop header
LB: loop body
LE: loop exit
PB: predicated region body
PF: predicated region fallthrough
CT: control target
= control target key end

     0   :  { %s158_s6 = smov [#allocation2]   ;;  %s251_s0 = inlined_call_operand.hbm [shape: f32[8,16,16], index: 0, kind: input, shape index: {}]   ;;  %s252_s1 = inlined_call_operand.vmem [shape: f32[8,11,11], index: 1, kind: output, shape index: {}]  }
   0x1   :  { %s13_s7 = sshll.u32 %s158_s6, 4  ;;  %s134_s10 = scalar_lea.hbm %s251_s0, 1536  ;;  %s14_s7 = int_to_ptr.vmem [resolvable:$true] %s13_s7 }
   0x2   :  { %p135_p0 = scmp.ne.s32.totalorder %s251_s0, %s134_s10  ;;  %s136_s15 = scalar_lea.hbm %s251_s0, 2048 }
   0x3   :  { %p137_p1 = scmp.lt.u32.totalorder %s136_s15, %s134_s10  ;;  %p138_p2 = scmp.lt.u32.totalorder %s134_s10, %s251_s0 }
   0x5   :  { %p139_p3 = por %p138_p2, %p137_p1 }
   0x7   :  { %p140_p4 = pnand %p139_p3, %p135_p0 }
   0x9   :  { %143 = shalt.err (!%p140_p4)  }
   0xa   :  { %s144_s18 = scalar_lea.vmem %s14_s7, 1536  ;;  %s148_s19 = scalar_lea.vmem %s14_s7, 2048 }
   0xb   :  { %p145_p5 = scmp.ne.s32.totalorder %s14_s7, %s144_s18  ;;  %p149_p6 = scmp.lt.s32.totalorder %s14_s7, %s14_s7 }
   0xc   :  { %p150_p7 = scmp.lt.s32.totalorder %s148_s19, %s144_s18 }
   0xe   :  { %p151_p8 = por %p150_p7, %p149_p6 }
  0x10   :  { %p152_p9 = pnand %p151_p8, %p145_p5 }
  0x12   :  { %155 = shalt.err (!%p152_p9)  }
  0x13   :  { %s159_s20 = smov 256   ;;  %s160_s21 = smov 12  }
  0x14   :  { %16 = dma.hbm_to_vmem [thread:$0]  %s251_s0, 1536, %s14_s7, [#allocation3], %s159_s20, %s159_s20, %s160_s21 }
  0x15   :  { %156 = dma.done.wait [#allocation3], 1536 }
  0x16   :  { %157 = vsyncadd [#allocation3], 4294965760  ;;  %v23_v0 = vld [vmem:[#allocation2 + $0x11] sm:$0xff]  ;;  %v21_v1 = vld [vmem:[#allocation2 + $0x1] sm:$0xff]  ;;  %s161_s24 = smov 126   ;;  %vm101_vm0 = vcmask 89088  }
  0x17   :  { %57 = vrot.lane.b32.xlu1 %v23_v0, %s161_s24  ;;  %53 = vrot.lane.b32.xlu0 %v21_v1, %s161_s24  ;;  %v24_v2 = vld [vmem:[#allocation2 + $0x19] sm:$0x7]  ;;  %v22_v3 = vld [vmem:[#allocation2 + $0x9] sm:$0x7]  ;;  %v25_v5 = vld [vmem:[#allocation2 + $0x21] sm:$0xff]  ;;  %vm103_vm1 = vcmask 83968  }
  0x18   :  { %v26_v4 = vld [vmem:[#allocation2 + $0x29] sm:$0x7]  ;;  %v28_v6 = vld [vmem:[#allocation2 + $0x39] sm:$0x7]  ;;  %v27_v7 = vld [vmem:[#allocation2 + $0x31] sm:$0xff] }
  0x19   :  { %v30_v8 = vld [vmem:[#allocation2 + $0x49] sm:$0x7]  ;;  %v29_v9 = vld [vmem:[#allocation2 + $0x41] sm:$0xff]  ;;  %v32_v10 = vld [vmem:[#allocation2 + $0x59] sm:$0x7] }
  0x1a   :  { %v31_v11 = vld [vmem:[#allocation2 + $0x51] sm:$0xff]  ;;  %v34_v12 = vld [vmem:[#allocation2 + $0x69] sm:$0x7]  ;;  %v33_v13 = vld [vmem:[#allocation2 + $0x61] sm:$0xff] }
  0x1b   :  { %59 = vrot.lane.b32.xlu1 %v24_v2, %s161_s24  ;;  %55 = vrot.lane.b32.xlu0 %v22_v3, %s161_s24  ;;  %v36_v14 = vld [vmem:[#allocation2 + $0x79] sm:$0x7]  ;;  %v35_v15 = vld [vmem:[#allocation2 + $0x71] sm:$0xff] }
  0x1f   :  { %63 = vrot.lane.b32.xlu1 %v26_v4, %s161_s24  ;;  %61 = vrot.lane.b32.xlu0 %v25_v5, %s161_s24 }
  0x23   :  { %67 = vrot.lane.b32.xlu1 %v28_v6, %s161_s24  ;;  %65 = vrot.lane.b32.xlu0 %v27_v7, %s161_s24 }
  0x27   :  { %71 = vrot.lane.b32.xlu1 %v30_v8, %s161_s24  ;;  %69 = vrot.lane.b32.xlu0 %v29_v9, %s161_s24 }
  0x2b   :  { %75 = vrot.lane.b32.xlu1 %v32_v10, %s161_s24  ;;  %73 = vrot.lane.b32.xlu0 %v31_v11, %s161_s24 }
  0x2f   :  { %79 = vrot.lane.b32.xlu1 %v34_v12, %s161_s24  ;;  %77 = vrot.lane.b32.xlu0 %v33_v13, %s161_s24 }
  0x33   :  { %83 = vrot.lane.b32.xlu1 %v36_v14, %s161_s24  ;;  %81 = vrot.lane.b32.xlu0 %v35_v15, %s161_s24 }
  0x89   :  { %v58_v16 = vpop.permute.xlu1 %57  ;;  %v54_v17 = vpop.permute.xlu0 %53 }
  0x8a   :  { %105 = vst.msk [vmem:[%s252_s1 + $0x10] sm:$0xff] %vm101_vm0, %v58_v16  ;;  %102 = vst.msk [vmem:[%s252_s1] sm:$0xff] %vm101_vm0, %v54_v17 }
  0x8d   :  { %v60_v18 = vpop.permute.xlu1 %59  ;;  %v56_v19 = vpop.permute.xlu0 %55 }
  0x8e   :  { %106 = vst.msk [vmem:[%s252_s1 + $0x18] sm:$0x7] %vm103_vm1, %v60_v18  ;;  %104 = vst.msk [vmem:[%s252_s1 + $0x8] sm:$0x7] %vm103_vm1, %v56_v19 }
  0x91   :  { %v64_v20 = vpop.permute.xlu1 %63  ;;  %v62_v21 = vpop.permute.xlu0 %61 }
  0x92   :  { %108 = vst.msk [vmem:[%s252_s1 + $0x28] sm:$0x7] %vm103_vm1, %v64_v20 }
  0x93   :  { %107 = vst.msk [vmem:[%s252_s1 + $0x20] sm:$0xff] %vm101_vm0, %v62_v21 }
  0x95   :  { %v68_v22 = vpop.permute.xlu1 %67  ;;  %v66_v23 = vpop.permute.xlu0 %65 }
  0x96   :  { %110 = vst.msk [vmem:[%s252_s1 + $0x38] sm:$0x7] %vm103_vm1, %v68_v22 }
  0x97   :  { %109 = vst.msk [vmem:[%s252_s1 + $0x30] sm:$0xff] %vm101_vm0, %v66_v23 }
  0x99   :  { %v72_v24 = vpop.permute.xlu1 %71  ;;  %v70_v25 = vpop.permute.xlu0 %69 }
  0x9a   :  { %112 = vst.msk [vmem:[%s252_s1 + $0x48] sm:$0x7] %vm103_vm1, %v72_v24 }
  0x9b   :  { %111 = vst.msk [vmem:[%s252_s1 + $0x40] sm:$0xff] %vm101_vm0, %v70_v25 }
  0x9d   :  { %v76_v26 = vpop.permute.xlu1 %75  ;;  %v74_v27 = vpop.permute.xlu0 %73 }
  0x9e   :  { %114 = vst.msk [vmem:[%s252_s1 + $0x58] sm:$0x7] %vm103_vm1, %v76_v26 }
  0x9f   :  { %113 = vst.msk [vmem:[%s252_s1 + $0x50] sm:$0xff] %vm101_vm0, %v74_v27 }
  0xa1   :  { %v80_v28 = vpop.permute.xlu1 %79  ;;  %v78_v29 = vpop.permute.xlu0 %77 }
  0xa2   :  { %116 = vst.msk [vmem:[%s252_s1 + $0x68] sm:$0x7] %vm103_vm1, %v80_v28 }
  0xa3   :  { %115 = vst.msk [vmem:[%s252_s1 + $0x60] sm:$0xff] %vm101_vm0, %v78_v29 }
  0xa5   :  { %v84_v30 = vpop.permute.xlu1 %83  ;;  %v82_v31 = vpop.permute.xlu0 %81 }
  0xa6   :  { %118 = vst.msk [vmem:[%s252_s1 + $0x78] sm:$0x7] %vm103_vm1, %v84_v30 }
  0xa7   :  { %117 = vst.msk [vmem:[%s252_s1 + $0x70] sm:$0xff] %vm101_vm0, %v82_v31 }
  0xa8   :  { %123 = vsyncmov [#allocation3] }
  0xab   :  { %s124_s26 = vpop.sfrf %123 }
  0xac   :  { %p129_p10 = scmp.ne.s32.totalorder %s124_s26, 0 }
  0xae   :  { %128 = shalt.err (%p129_p10)  }

</bundles_post_ra>
